<compile_context>
chip_gen: v7x
topology: tpu7x:2x2x1
jax: 0.10.0
libtpu: 0.0.40
codegen_flags: <defaults>
</compile_context>

<pallas_src>
import jax
import jax.numpy as jnp
from jax.experimental import pallas as pl
from jax.experimental.pallas import tpu as pltpu

DP = 128  # padded feature width (hidden_size 64 -> 128 lanes, lane-dense stores)


def _round_up(x, m):
    return ((x + m - 1) // m) * m


def _pad_vec(v, target):
    return jnp.pad(v, (0, target - v.shape[0]))


# ----------------------------- Pallas kernels ------------------------------

def _xw_kernel(x_ref, w_ref, o_ref):
    # Per row-tile feature transform: XW = X @ W (bf16 in, f32 MXU acc, bf16 out).
    o_ref[...] = jnp.dot(x_ref[...], w_ref[...],
                         preferred_element_type=jnp.float32).astype(o_ref.dtype)


def _agg_kernel(a_ref, xw_ref, scale_ref, shift_ref, o_ref, acc_ref):
    # out(i) = relu( (sum_k A(i,k) @ XW(k)) * scale + shift )
    # scale/shift carry the folded GCNConv bias + eval-mode BatchNorm.
    k = pl.program_id(1)

    @pl.when(k == 0)
    def _():
        acc_ref[...] = jnp.zeros_like(acc_ref)

    acc_ref[...] += jnp.dot(a_ref[...], xw_ref[...],
                            preferred_element_type=jnp.float32)

    @pl.when(k == pl.num_programs(1) - 1)
    def _():
        h = acc_ref[...] * scale_ref[...] + shift_ref[...]
        o_ref[...] = jnp.maximum(h, 0.0)


def _edge_mlp_kernel(e_ref, w1_ref, b1_ref, w2_ref, b2_ref, o_ref):
    # edge_fc: Linear -> ReLU -> Linear -> Sigmoid, tiled over edges.
    h = jnp.dot(e_ref[...], w1_ref[...], preferred_element_type=jnp.float32) + b1_ref[...]
    h = jnp.maximum(h, 0.0)
    z = jnp.dot(h, w2_ref[...], preferred_element_type=jnp.float32) + b2_ref[...]
    o_ref[...] = jax.nn.sigmoid(z)


# ------------------------------ Pallas wrappers ------------------------------

def feature_transform(x_bf16, w_bf16, tile_m):
    """XW = X @ W, row-tiled; W stays resident across the grid."""
    n_p, din = x_bf16.shape
    dout = w_bf16.shape[1]
    grid = (n_p // tile_m,)
    return pl.pallas_call(
        _xw_kernel,
        grid=grid,
        in_specs=[pl.BlockSpec((tile_m, din), lambda i: (i, 0)),
                  pl.BlockSpec((din, dout), lambda i: (0, 0))],
        out_specs=pl.BlockSpec((tile_m, dout), lambda i: (i, 0)),
        out_shape=jax.ShapeDtypeStruct((n_p, dout), jnp.bfloat16),
        compiler_params=pltpu.CompilerParams(
            dimension_semantics=("parallel",),
            vmem_limit_bytes=32 * 1024 * 1024),
        cost_estimate=pl.CostEstimate(
            flops=2 * n_p * din * dout,
            transcendentals=0,
            bytes_accessed=n_p * din * 2 + din * dout * 2 + n_p * dout * 2),
    )(x_bf16, w_bf16)


def aggregate(a_bf16, xw_bf16, scale2d, shift2d, tile):
    """H = relu((A @ XW) * scale + shift); tiled over (row, contraction)."""
    n_p = a_bf16.shape[0]
    dp = xw_bf16.shape[1]
    grid = (n_p // tile, n_p // tile)
    return pl.pallas_call(
        _agg_kernel,
        grid=grid,
        in_specs=[pl.BlockSpec((tile, tile), lambda i, k: (i, k)),
                  pl.BlockSpec((tile, dp), lambda i, k: (k, 0)),
                  pl.BlockSpec((1, dp), lambda i, k: (0, 0)),
                  pl.BlockSpec((1, dp), lambda i, k: (0, 0))],
        out_specs=pl.BlockSpec((tile, dp), lambda i, k: (i, 0)),
        out_shape=jax.ShapeDtypeStruct((n_p, dp), jnp.float32),
        scratch_shapes=[pltpu.VMEM((tile, dp), jnp.float32)],
        compiler_params=pltpu.CompilerParams(
            dimension_semantics=("parallel", "arbitrary"),
            vmem_limit_bytes=32 * 1024 * 1024),
        cost_estimate=pl.CostEstimate(
            flops=2 * n_p * n_p * dp,
            transcendentals=0,
            bytes_accessed=n_p * n_p * 2 + n_p * dp * 2 + n_p * dp * 4),
    )(a_bf16, xw_bf16, scale2d, shift2d)


def gcn_layer(a_bf16, x_bf16, w_pad_bf16, scale_pad, shift_pad, tile):
    xw = feature_transform(x_bf16, w_pad_bf16, tile)
    return aggregate(a_bf16, xw, scale_pad[None, :], shift_pad[None, :], tile)


def edge_mlp(e, w1, b1_2d, w2, b2_2d, tile_e):
    e_p, dfeat = e.shape
    hid = w1.shape[1]
    grid = (e_p // tile_e,)
    return pl.pallas_call(
        _edge_mlp_kernel,
        grid=grid,
        in_specs=[pl.BlockSpec((tile_e, dfeat), lambda i: (i, 0)),
                  pl.BlockSpec((dfeat, hid), lambda i: (0, 0)),
                  pl.BlockSpec((1, hid), lambda i: (0, 0)),
                  pl.BlockSpec((hid, 1), lambda i: (0, 0)),
                  pl.BlockSpec((1, 1), lambda i: (0, 0))],
        out_specs=pl.BlockSpec((tile_e, 1), lambda i: (i, 0)),
        out_shape=jax.ShapeDtypeStruct((e_p, 1), jnp.float32),
        compiler_params=pltpu.CompilerParams(
            dimension_semantics=("parallel",),
            vmem_limit_bytes=32 * 1024 * 1024),
        cost_estimate=pl.CostEstimate(
            flops=2 * e_p * dfeat * hid + 2 * e_p * hid,
            transcendentals=e_p,
            bytes_accessed=e_p * dfeat * 4 + dfeat * hid * 4 + hid * 8 + e_p * 4),
    )(e, w1, b1_2d, w2, b2_2d)


# ------------------------------ JAX glue ------------------------------------

def gcn_norm_dense(edge_index, edge_weight, num_nodes):
    """Dense equivalent of PyG gcn_norm: add self-loops, symmetric normalize.

    Message passing aggregates x[row] into out[col], so A_norm[col, row] = norm.
    """
    row, col = edge_index[0], edge_index[1]
    if edge_weight is None:
        edge_weight = jnp.ones(row.shape[0], dtype=jnp.float32)
    loop = jnp.arange(num_nodes, dtype=edge_index.dtype)
    row = jnp.concatenate([row, loop])
    col = jnp.concatenate([col, loop])
    w = jnp.concatenate([edge_weight.astype(jnp.float32),
                         jnp.ones((num_nodes,), jnp.float32)])
    deg = jnp.zeros((num_nodes,), jnp.float32).at[col].add(w)
    dis = jnp.where(deg > 0, 1.0 / jnp.sqrt(deg), 0.0)
    norm = dis[row] * w * dis[col]
    a = jnp.zeros((num_nodes, num_nodes), jnp.float32).at[col, row].add(norm)
    return a


def init_params(key, num_users, num_items, embedding_dim=16, hidden_size=64):
    ks = jax.random.split(key, 8)

    def glorot(k, shape):
        lim = jnp.sqrt(6.0 / (shape[0] + shape[1]))
        return jax.random.uniform(k, shape, jnp.float32, -lim, lim)

    p = {}
    p["user_emb"] = jax.random.uniform(ks[0], (num_users, embedding_dim), jnp.float32, -0.01, 0.01)
    p["item_emb"] = jax.random.uniform(ks[1], (num_items, embedding_dim), jnp.float32, -0.01, 0.01)
    p["w1"] = glorot(ks[2], (embedding_dim, hidden_size)); p["b1"] = jnp.zeros((hidden_size,), jnp.float32)
    p["w2"] = glorot(ks[3], (hidden_size, hidden_size));   p["b2"] = jnp.zeros((hidden_size,), jnp.float32)
    p["w3"] = glorot(ks[4], (hidden_size, hidden_size));   p["b3"] = jnp.zeros((hidden_size,), jnp.float32)
    for name in ("bn1", "bn2"):   # BatchNorm1d params + running stats (eval mode)
        p[name + "_gamma"] = jnp.ones((hidden_size,), jnp.float32)
        p[name + "_beta"] = jnp.zeros((hidden_size,), jnp.float32)
        p[name + "_mean"] = jnp.zeros((hidden_size,), jnp.float32)
        p[name + "_var"] = jnp.ones((hidden_size,), jnp.float32)
    p["fc1_w"] = glorot(ks[5], (2 * embedding_dim, hidden_size)); p["fc1_b"] = jnp.zeros((hidden_size,), jnp.float32)
    p["fc2_w"] = glorot(ks[6], (hidden_size, 1));                  p["fc2_b"] = jnp.zeros((1,), jnp.float32)
    return p


def gcn_forward(params, edge_index, edge_weight=None):
    user_embs = params["user_emb"]
    item_embs = params["item_emb"]
    num_users = user_embs.shape[0]
    x = jnp.concatenate([user_embs, item_embs], axis=0)
    n = x.shape[0]
    hidden = params["w1"].shape[1]
    eps = 1e-5

    # --- tiling / padding (nodes padded to a multiple of the A tile) ---------
    tile = min(512, _round_up(n, 128))
    npad = _round_up(n, tile)

    a = gcn_norm_dense(edge_index, edge_weight, n)
    a_bf16 = jnp.pad(a, ((0, npad - n), (0, npad - n))).astype(jnp.bfloat16)
    x_p = jnp.pad(x, ((0, npad - n), (0, 0))).astype(jnp.bfloat16)

    # --- layer 1: conv1 -> bn1 -> relu  (dropout = identity in eval mode) ----
    s1 = params["bn1_gamma"] / jnp.sqrt(params["bn1_var"] + eps)
    sh1 = (params["bn1_beta"] - params["bn1_mean"] * s1) + params["b1"] * s1
    w1p = jnp.pad(params["w1"], ((0, 0), (0, DP - hidden))).astype(jnp.bfloat16)
    x1 = gcn_layer(a_bf16, x_p, w1p, _pad_vec(s1, DP), _pad_vec(sh1, DP), tile)

    # --- layer 2: conv2 -> bn2 -> relu ---------------------------------------
    s2 = params["bn2_gamma"] / jnp.sqrt(params["bn2_var"] + eps)
    sh2 = (params["bn2_beta"] - params["bn2_mean"] * s2) + params["b2"] * s2
    w2p = jnp.pad(params["w2"], ((0, DP - hidden), (0, DP - hidden))).astype(jnp.bfloat16)
    x2 = gcn_layer(a_bf16, x1.astype(jnp.bfloat16), w2p,
                   _pad_vec(s2, DP), _pad_vec(sh2, DP), tile)

    # --- layer 3: conv3 -> relu (no BN: scale=1 on real lanes, 0 on pad) -----
    s3 = jnp.ones((hidden,), jnp.float32)
    sh3 = params["b3"]
    w3p = jnp.pad(params["w3"], ((0, DP - hidden), (0, DP - hidden))).astype(jnp.bfloat16)
    x3 = gcn_layer(a_bf16, x2.astype(jnp.bfloat16), w3p,
                   _pad_vec(s3, DP), _pad_vec(sh3, DP), tile)

    x_out = x3[:n, :hidden]

    # --- edge prediction head: uses RAW embeddings, exactly as the PyTorch code
    user_ids = edge_index[0]
    item_ids = edge_index[1] - num_users
    edge_embs = jnp.concatenate([user_embs[user_ids], item_embs[item_ids]], axis=1)
    num_edges = edge_embs.shape[0]
    tile_e = min(512, _round_up(num_edges, 8))
    epad = _round_up(num_edges, tile_e)
    e_p = jnp.pad(edge_embs, ((0, epad - num_edges), (0, 0)))
    pred = edge_mlp(e_p, params["fc1_w"], params["fc1_b"][None, :],
                    params["fc2_w"], params["fc2_b"][None, :], tile_e)[:num_edges]
    return pred, x_out


# ------------------------------ pure-JAX reference ---------------------------

def gcn_forward_ref(params, edge_index, edge_weight=None):
    user_embs = params["user_emb"]
    item_embs = params["item_emb"]
    num_users = user_embs.shape[0]
    x = jnp.concatenate([user_embs, item_embs], axis=0)
    n = x.shape[0]
    eps = 1e-5
    a = gcn_norm_dense(edge_index, edge_weight, n)

    def bn(h, pre):
        s = params[pre + "_gamma"] / jnp.sqrt(params[pre + "_var"] + eps)
        return (h - params[pre + "_mean"]) * s + params[pre + "_beta"]

    h = a @ (x @ params["w1"]) + params["b1"]
    h = jnp.maximum(bn(h, "bn1"), 0.0)
    h = a @ (h @ params["w2"]) + params["b2"]
    h = jnp.maximum(bn(h, "bn2"), 0.0)
    h = jnp.maximum(a @ (h @ params["w3"]) + params["b3"], 0.0)

    user_ids = edge_index[0]
    item_ids = edge_index[1] - num_users
    e = jnp.concatenate([user_embs[user_ids], item_embs[item_ids]], axis=1)
    z = jnp.maximum(e @ params["fc1_w"] + params["fc1_b"], 0.0)
    pred = jax.nn.sigmoid(z @ params["fc2_w"] + params["fc2_b"])
    return pred, h


if __name__ == "__main__":
    key = jax.random.PRNGKey(0)
    num_users, num_items = 8, 8
    embedding_dim, hidden_size = 16, 64
    num_edges = 16

    pkey, ukey, ikey, wkey = jax.random.split(key, 4)
    params = init_params(pkey, num_users, num_items, embedding_dim, hidden_size)

    users = jax.random.randint(ukey, (num_edges,), 0, num_users, dtype=jnp.int32)
    items = jax.random.randint(ikey, (num_edges,), 0, num_items, dtype=jnp.int32) + num_users
    edge_index = jnp.stack([users, items], axis=0)                      # (2, E) int32
    edge_weight = jax.random.uniform(wkey, (num_edges,), jnp.float32, 0.5, 1.5)

    fwd = jax.jit(gcn_forward)
    pred, node_x = fwd(params, edge_index, edge_weight)
    pred = jax.block_until_ready(pred)
    node_x = jax.block_until_ready(node_x)

    assert pred.shape == (num_edges, 1) and pred.dtype == jnp.float32
    assert node_x.shape == (num_users + num_items, hidden_size)
    assert bool(jnp.all((pred >= 0.0) & (pred <= 1.0)))
    assert bool(jnp.all(jnp.isfinite(node_x)))

    # correctness vs pure-JAX reference (bf16 MXU path -> loose tolerance on nodes)
    pred_ref, node_ref = gcn_forward_ref(params, edge_index, edge_weight)
    assert bool(jnp.allclose(pred, pred_ref, atol=5e-4, rtol=1e-3))
    assert bool(jnp.allclose(node_x, node_ref, atol=1e-3, rtol=5e-2))

    print("KERNEL_OK")
</pallas_src>

<mosaic_0001>
module attributes {stable_mosaic.version = 11 : i64} {
  func.func private @main(%arg0: i32) attributes {dimension_semantics = [#tpu.dimension_semantics<core_parallel>], iteration_bounds = array<i64: 2>, tpu.core_type = #tpu.core_type<sc_scalar_subcore>, window_params = []} {
    return
  }
}

module attributes {stable_mosaic.version = 11 : i64} {
  func.func private @main(%arg0: i32) attributes {dimension_semantics = [#tpu.dimension_semantics<core_parallel>], iteration_bounds = array<i64: 2>, tpu.core_type = #tpu.core_type<sc_scalar_subcore>, window_params = []} {
    return
  }
}

module attributes {stable_mosaic.version = 11 : i64} {
  func.func @_edge_mlp_kernel(%arg0: i32, %arg1: memref<16x32xf32, #tpu.memory_space<vmem>>, %arg2: memref<32x64xf32, #tpu.memory_space<vmem>>, %arg3: memref<1x64xf32, #tpu.memory_space<vmem>>, %arg4: memref<64x1xf32, #tpu.memory_space<vmem>>, %arg5: memref<1x1xf32, #tpu.memory_space<vmem>>, %arg6: memref<16x1xf32, #tpu.memory_space<vmem>>) attributes {dimension_semantics = [#tpu.dimension_semantics<parallel>], iteration_bounds = array<i64: 1>, scalar_prefetch = 0 : i64, scratch_operands = 0 : i64, tpu.core_type = #tpu.core_type<tc>, window_params = [{transform_indices = @transform_0, window_bounds = array<i64: 16, 32>}, {pipeline_mode = #tpu.pipeline_mode<synchronous>, transform_indices = @transform_1, window_bounds = array<i64: 32, 64>}, {pipeline_mode = #tpu.pipeline_mode<synchronous>, transform_indices = @transform_2, window_bounds = array<i64: 1, 64>}, {pipeline_mode = #tpu.pipeline_mode<synchronous>, transform_indices = @transform_3, window_bounds = array<i64: 64, 1>}, {pipeline_mode = #tpu.pipeline_mode<synchronous>, transform_indices = @transform_4, window_bounds = array<i64: 1, 1>}, {transform_indices = @transform_5, window_bounds = array<i64: 16, 1>}]} {
    %c0 = arith.constant 0 : index
    %c0_0 = arith.constant 0 : index
    %0 = vector.load %arg1[%c0, %c0_0] : memref<16x32xf32, #tpu.memory_space<vmem>>, vector<16x32xf32>
    %c0_1 = arith.constant 0 : index
    %c0_2 = arith.constant 0 : index
    %1 = vector.load %arg2[%c0_1, %c0_2] : memref<32x64xf32, #tpu.memory_space<vmem>>, vector<32x64xf32>
    %cst = arith.constant dense<0.000000e+00> : vector<16x64xf32>
    %2 = tpu.matmul %0, %1, %cst {dimension_numbers = #tpu.dot_dimension_numbers<[1], [0], [0], [1], [0, 0, 1, 1], [], []>} : vector<16x32xf32>, vector<32x64xf32>, vector<16x64xf32> -> vector<16x64xf32>
    %c0_3 = arith.constant 0 : index
    %c0_4 = arith.constant 0 : index
    %3 = vector.load %arg3[%c0_3, %c0_4] : memref<1x64xf32, #tpu.memory_space<vmem>>, vector<1x64xf32>
    %4 = vector.broadcast %3 : vector<1x64xf32> to vector<16x64xf32>
    %5 = arith.addf %2, %4 : vector<16x64xf32>
    %cst_5 = arith.constant 0.000000e+00 : f32
    %6 = vector.broadcast %cst_5 : f32 to vector<16x64xf32>
    %7 = arith.maximumf %5, %6 : vector<16x64xf32>
    %c0_6 = arith.constant 0 : index
    %c0_7 = arith.constant 0 : index
    %8 = vector.load %arg4[%c0_6, %c0_7] : memref<64x1xf32, #tpu.memory_space<vmem>>, vector<64x1xf32>
    %cst_8 = arith.constant dense<0.000000e+00> : vector<16x1xf32>
    %9 = tpu.matmul %7, %8, %cst_8 {dimension_numbers = #tpu.dot_dimension_numbers<[1], [0], [0], [1], [0, 0, 1, 1], [], []>} : vector<16x64xf32>, vector<64x1xf32>, vector<16x1xf32> -> vector<16x1xf32>
    %c0_9 = arith.constant 0 : index
    %c0_10 = arith.constant 0 : index
    %10 = vector.load %arg5[%c0_9, %c0_10] : memref<1x1xf32, #tpu.memory_space<vmem>>, vector<1x1xf32>
    %11 = vector.broadcast %10 : vector<1x1xf32> to vector<16x1xf32>
    %12 = arith.addf %9, %11 : vector<16x1xf32>
    %13 = arith.negf %12 : vector<16x1xf32>
    %14 = math.exp %13 : vector<16x1xf32>
    %cst_11 = arith.constant 1.000000e+00 : f32
    %15 = vector.broadcast %cst_11 : f32 to vector<16x1xf32>
    %16 = arith.addf %15, %14 : vector<16x1xf32>
    %17 = arith.divf %15, %16 : vector<16x1xf32>
    %c0_12 = arith.constant 0 : index
    %c0_13 = arith.constant 0 : index
    %18 = vector.load %arg6[%c0_12, %c0_13] : memref<16x1xf32, #tpu.memory_space<vmem>>, vector<16x1xf32>
    tpu.vector_store %arg6[%c0_12, %c0_13], %17 {strides = array<i32>} : memref<16x1xf32, #tpu.memory_space<vmem>>, vector<16x1xf32>,
    return
  }
  func.func @transform_0(%arg0: i32) -> (i32, i32) {
    %c0_i32 = arith.constant 0 : i32
    %c0_i32_0 = arith.constant 0 : i32
    return %arg0, %c0_i32 : i32, i32
  }
  func.func @transform_1(%arg0: i32) -> (i32, i32) {
    %c0_i32 = arith.constant 0 : i32
    %c0_i32_0 = arith.constant 0 : i32
    %c0_i32_1 = arith.constant 0 : i32
    return %c0_i32, %c0_i32_0 : i32, i32
  }
  func.func @transform_2(%arg0: i32) -> (i32, i32) {
    %c0_i32 = arith.constant 0 : i32
    %c0_i32_0 = arith.constant 0 : i32
    %c0_i32_1 = arith.constant 0 : i32
    return %c0_i32, %c0_i32_0 : i32, i32
  }
  func.func @transform_3(%arg0: i32) -> (i32, i32) {
    %c0_i32 = arith.constant 0 : i32
    %c0_i32_0 = arith.constant 0 : i32
    %c0_i32_1 = arith.constant 0 : i32
    return %c0_i32, %c0_i32_0 : i32, i32
  }
  func.func @transform_4(%arg0: i32) -> (i32, i32) {
    %c0_i32 = arith.constant 0 : i32
    %c0_i32_0 = arith.constant 0 : i32
    %c0_i32_1 = arith.constant 0 : i32
    return %c0_i32, %c0_i32_0 : i32, i32
  }
  func.func @transform_5(%arg0: i32) -> (i32, i32) {
    %c0_i32 = arith.constant 0 : i32
    %c0_i32_0 = arith.constant 0 : i32
    return %arg0, %c0_i32 : i32, i32
  }
}

module attributes {stable_mosaic.version = 11 : i64} {
  func.func @_xw_kernel(%arg0: i32, %arg1: memref<128x16xbf16, #tpu.memory_space<vmem>>, %arg2: memref<16x128xbf16, #tpu.memory_space<vmem>>, %arg3: memref<128x128xbf16, #tpu.memory_space<vmem>>) attributes {dimension_semantics = [#tpu.dimension_semantics<parallel>], iteration_bounds = array<i64: 1>, scalar_prefetch = 0 : i64, scratch_operands = 0 : i64, tpu.core_type = #tpu.core_type<tc>, window_params = [{transform_indices = @transform_0, window_bounds = array<i64: 128, 16>}, {pipeline_mode = #tpu.pipeline_mode<synchronous>, transform_indices = @transform_1, window_bounds = array<i64: 16, 128>}, {transform_indices = @transform_2, window_bounds = array<i64: 128, 128>}]} {
    %c0 = arith.constant 0 : index
    %c0_0 = arith.constant 0 : index
    %0 = vector.load %arg1[%c0, %c0_0] : memref<128x16xbf16, #tpu.memory_space<vmem>>, vector<128x16xbf16>
    %c0_1 = arith.constant 0 : index
    %c0_2 = arith.constant 0 : index
    %1 = vector.load %arg2[%c0_1, %c0_2] : memref<16x128xbf16, #tpu.memory_space<vmem>>, vector<16x128xbf16>
    %cst = arith.constant dense<0.000000e+00> : vector<128x128xf32>
    %2 = tpu.matmul %0, %1, %cst {dimension_numbers = #tpu.dot_dimension_numbers<[1], [0], [0], [1], [0, 0, 1, 1], [], []>} : vector<128x16xbf16>, vector<16x128xbf16>, vector<128x128xf32> -> vector<128x128xf32>
    %3 = arith.truncf %2 : vector<128x128xf32> to vector<128x128xbf16>
    %c0_3 = arith.constant 0 : index
    %c0_4 = arith.constant 0 : index
    %4 = vector.load %arg3[%c0_3, %c0_4] : memref<128x128xbf16, #tpu.memory_space<vmem>>, vector<128x128xbf16>
    tpu.vector_store %arg3[%c0_3, %c0_4], %3 {strides = array<i32>} : memref<128x128xbf16, #tpu.memory_space<vmem>>, vector<128x128xbf16>,
    return
  }
  func.func @transform_0(%arg0: i32) -> (i32, i32) {
    %c0_i32 = arith.constant 0 : i32
    %c0_i32_0 = arith.constant 0 : i32
    return %arg0, %c0_i32 : i32, i32
  }
  func.func @transform_1(%arg0: i32) -> (i32, i32) {
    %c0_i32 = arith.constant 0 : i32
    %c0_i32_0 = arith.constant 0 : i32
    %c0_i32_1 = arith.constant 0 : i32
    return %c0_i32, %c0_i32_0 : i32, i32
  }
  func.func @transform_2(%arg0: i32) -> (i32, i32) {
    %c0_i32 = arith.constant 0 : i32
    %c0_i32_0 = arith.constant 0 : i32
    return %arg0, %c0_i32 : i32, i32
  }
}

module attributes {stable_mosaic.version = 11 : i64} {
  func.func @_agg_kernel(%arg0: i32, %arg1: i32, %arg2: memref<128x128xbf16, #tpu.memory_space<vmem>>, %arg3: memref<128x128xbf16, #tpu.memory_space<vmem>>, %arg4: memref<1x128xf32, #tpu.memory_space<vmem>>, %arg5: memref<1x128xf32, #tpu.memory_space<vmem>>, %arg6: memref<128x128xf32, #tpu.memory_space<vmem>>, %arg7: memref<128x128xf32, #tpu.memory_space<vmem>>) attributes {dimension_semantics = [#tpu.dimension_semantics<parallel>, #tpu.dimension_semantics<arbitrary>], iteration_bounds = array<i64: 1, 1>, scalar_prefetch = 0 : i64, scratch_operands = 1 : i64, tpu.core_type = #tpu.core_type<tc>, window_params = [{transform_indices = @transform_0, window_bounds = array<i64: 128, 128>}, {transform_indices = @transform_1, window_bounds = array<i64: 128, 128>}, {pipeline_mode = #tpu.pipeline_mode<synchronous>, transform_indices = @transform_2, window_bounds = array<i64: 1, 128>}, {pipeline_mode = #tpu.pipeline_mode<synchronous>, transform_indices = @transform_3, window_bounds = array<i64: 1, 128>}, {transform_indices = @transform_4, window_bounds = array<i64: 128, 128>}]} {
    %c0_i32 = arith.constant 0 : i32
    %0 = arith.cmpi eq, %arg1, %c0_i32 : i32
    %1 = arith.extui %0 : i1 to i32
    %c0_i32_0 = arith.constant 0 : i32
    %2 = arith.cmpi ne, %1, %c0_i32_0 : i32
    scf.if %2 {
      %cst_10 = arith.constant 0.000000e+00 : f32
      %12 = vector.broadcast %cst_10 : f32 to vector<128x128xf32>
      %c0_11 = arith.constant 0 : index
      %c0_12 = arith.constant 0 : index
      %13 = vector.load %arg7[%c0_11, %c0_12] : memref<128x128xf32, #tpu.memory_space<vmem>>, vector<128x128xf32>
      tpu.vector_store %arg7[%c0_11, %c0_12], %12 {strides = array<i32>} : memref<128x128xf32, #tpu.memory_space<vmem>>, vector<128x128xf32>,
    } else {
    }
    %c0 = arith.constant 0 : index
    %c0_1 = arith.constant 0 : index
    %3 = vector.load %arg7[%c0, %c0_1] : memref<128x128xf32, #tpu.memory_space<vmem>>, vector<128x128xf32>
    %c0_2 = arith.constant 0 : index
    %c0_3 = arith.constant 0 : index
    %4 = vector.load %arg2[%c0_2, %c0_3] : memref<128x128xbf16, #tpu.memory_space<vmem>>, vector<128x128xbf16>
    %c0_4 = arith.constant 0 : index
    %c0_5 = arith.constant 0 : index
    %5 = vector.load %arg3[%c0_4, %c0_5] : memref<128x128xbf16, #tpu.memory_space<vmem>>, vector<128x128xbf16>
    %cst = arith.constant dense<0.000000e+00> : vector<128x128xf32>
    %6 = tpu.matmul %4, %5, %cst {dimension_numbers = #tpu.dot_dimension_numbers<[1], [0], [0], [1], [0, 0, 1, 1], [], []>} : vector<128x128xbf16>, vector<128x128xbf16>, vector<128x128xf32> -> vector<128x128xf32>
    %7 = arith.addf %3, %6 : vector<128x128xf32>
    %c0_6 = arith.constant 0 : index
    %c0_7 = arith.constant 0 : index
    %8 = vector.load %arg7[%c0_6, %c0_7] : memref<128x128xf32, #tpu.memory_space<vmem>>, vector<128x128xf32>
    tpu.vector_store %arg7[%c0_6, %c0_7], %7 {strides = array<i32>} : memref<128x128xf32, #tpu.memory_space<vmem>>, vector<128x128xf32>,
    %c0_i32_8 = arith.constant 0 : i32
    %9 = arith.cmpi eq, %arg1, %c0_i32_8 : i32
    %10 = arith.extui %9 : i1 to i32
    %c0_i32_9 = arith.constant 0 : i32
    %11 = arith.cmpi ne, %10, %c0_i32_9 : i32
    scf.if %11 {
      %c0_10 = arith.constant 0 : index
      %c0_11 = arith.constant 0 : index
      %12 = vector.load %arg7[%c0_10, %c0_11] : memref<128x128xf32, #tpu.memory_space<vmem>>, vector<128x128xf32>
      %c0_12 = arith.constant 0 : index
      %c0_13 = arith.constant 0 : index
      %13 = vector.load %arg4[%c0_12, %c0_13] : memref<1x128xf32, #tpu.memory_space<vmem>>, vector<1x128xf32>
      %14 = vector.broadcast %13 : vector<1x128xf32> to vector<128x128xf32>
      %15 = arith.mulf %12, %14 : vector<128x128xf32>
      %c0_14 = arith.constant 0 : index
      %c0_15 = arith.constant 0 : index
      %16 = vector.load %arg5[%c0_14, %c0_15] : memref<1x128xf32, #tpu.memory_space<vmem>>, vector<1x128xf32>
      %17 = vector.broadcast %16 : vector<1x128xf32> to vector<128x128xf32>
      %18 = arith.addf %15, %17 : vector<128x128xf32>
      %cst_16 = arith.constant 0.000000e+00 : f32
      %19 = vector.broadcast %cst_16 : f32 to vector<128x128xf32>
      %20 = arith.maximumf %18, %19 : vector<128x128xf32>
      %c0_17 = arith.constant 0 : index
      %c0_18 = arith.constant 0 : index
      %21 = vector.load %arg6[%c0_17, %c0_18] : memref<128x128xf32, #tpu.memory_space<vmem>>, vector<128x128xf32>
      tpu.vector_store %arg6[%c0_17, %c0_18], %20 {strides = array<i32>} : memref<128x128xf32, #tpu.memory_space<vmem>>, vector<128x128xf32>,
    } else {
    }
    return
  }
  func.func @transform_0(%arg0: i32, %arg1: i32) -> (i32, i32) {
    %c0_i32 = arith.constant 0 : i32
    return %arg0, %arg1 : i32, i32
  }
  func.func @transform_1(%arg0: i32, %arg1: i32) -> (i32, i32) {
    %c0_i32 = arith.constant 0 : i32
    %c0_i32_0 = arith.constant 0 : i32
    return %arg1, %c0_i32 : i32, i32
  }
  func.func @transform_2(%arg0: i32, %arg1: i32) -> (i32, i32) {
    %c0_i32 = arith.constant 0 : i32
    %c0_i32_0 = arith.constant 0 : i32
    %c0_i32_1 = arith.constant 0 : i32
    return %c0_i32, %c0_i32_0 : i32, i32
  }
  func.func @transform_3(%arg0: i32, %arg1: i32) -> (i32, i32) {
    %c0_i32 = arith.constant 0 : i32
    %c0_i32_0 = arith.constant 0 : i32
    %c0_i32_1 = arith.constant 0 : i32
    return %c0_i32, %c0_i32_0 : i32, i32
  }
  func.func @transform_4(%arg0: i32, %arg1: i32) -> (i32, i32) {
    %c0_i32 = arith.constant 0 : i32
    %c0_i32_0 = arith.constant 0 : i32
    return %arg0, %c0_i32 : i32, i32
  }
}

module attributes {stable_mosaic.version = 11 : i64} {
  func.func @_xw_kernel(%arg0: i32, %arg1: memref<128x128xbf16, #tpu.memory_space<vmem>>, %arg2: memref<128x128xbf16, #tpu.memory_space<vmem>>, %arg3: memref<128x128xbf16, #tpu.memory_space<vmem>>) attributes {dimension_semantics = [#tpu.dimension_semantics<parallel>], iteration_bounds = array<i64: 1>, scalar_prefetch = 0 : i64, scratch_operands = 0 : i64, tpu.core_type = #tpu.core_type<tc>, window_params = [{transform_indices = @transform_0, window_bounds = array<i64: 128, 128>}, {pipeline_mode = #tpu.pipeline_mode<synchronous>, transform_indices = @transform_1, window_bounds = array<i64: 128, 128>}, {transform_indices = @transform_2, window_bounds = array<i64: 128, 128>}]} {
    %c0 = arith.constant 0 : index
    %c0_0 = arith.constant 0 : index
    %0 = vector.load %arg1[%c0, %c0_0] : memref<128x128xbf16, #tpu.memory_space<vmem>>, vector<128x128xbf16>
    %c0_1 = arith.constant 0 : index
    %c0_2 = arith.constant 0 : index
    %1 = vector.load %arg2[%c0_1, %c0_2] : memref<128x128xbf16, #tpu.memory_space<vmem>>, vector<128x128xbf16>
    %cst = arith.constant dense<0.000000e+00> : vector<128x128xf32>
    %2 = tpu.matmul %0, %1, %cst {dimension_numbers = #tpu.dot_dimension_numbers<[1], [0], [0], [1], [0, 0, 1, 1], [], []>} : vector<128x128xbf16>, vector<128x128xbf16>, vector<128x128xf32> -> vector<128x128xf32>
    %3 = arith.truncf %2 : vector<128x128xf32> to vector<128x128xbf16>
    %c0_3 = arith.constant 0 : index
    %c0_4 = arith.constant 0 : index
    %4 = vector.load %arg3[%c0_3, %c0_4] : memref<128x128xbf16, #tpu.memory_space<vmem>>, vector<128x128xbf16>
    tpu.vector_store %arg3[%c0_3, %c0_4], %3 {strides = array<i32>} : memref<128x128xbf16, #tpu.memory_space<vmem>>, vector<128x128xbf16>,
    return
  }
  func.func @transform_0(%arg0: i32) -> (i32, i32) {
    %c0_i32 = arith.constant 0 : i32
    %c0_i32_0 = arith.constant 0 : i32
    return %arg0, %c0_i32 : i32, i32
  }
  func.func @transform_1(%arg0: i32) -> (i32, i32) {
    %c0_i32 = arith.constant 0 : i32
    %c0_i32_0 = arith.constant 0 : i32
    %c0_i32_1 = arith.constant 0 : i32
    return %c0_i32, %c0_i32_0 : i32, i32
  }
  func.func @transform_2(%arg0: i32) -> (i32, i32) {
    %c0_i32 = arith.constant 0 : i32
    %c0_i32_0 = arith.constant 0 : i32
    return %arg0, %c0_i32 : i32, i32
  }
}

</mosaic_0001>

<bundles_post_ra>
// kernel: gcn_forward.13
= control target key start
LH: loop header
LB: loop body
LE: loop exit
PB: predicated region body
PF: predicated region fallthrough
CT: control target
= control target key end

     0   :  { %vm35_vm0 = vcmask 261120   ;;  %vm134_vm1 = vcmask 523264   ;;  %vm228_vm2 = vcmask 7168   ;;  %s407_s1 = inlined_call_operand.vmem [shape: f32[32,64], index: 1, kind: input, shape index: {}]   ;;  %s408_s0 = inlined_call_operand.vmem [shape: f32[16,32], index: 0, kind: input, shape index: {}]   ;;  %s409_s3 = inlined_call_operand.vmem [shape: f32[64,1], index: 3, kind: input, shape index: {}]   ;;  %s410_s4 = inlined_call_operand.<no memory space> [shape: f32[1,1], index: 4, kind: input, shape index: {}]   ;;  %s411_s2 = inlined_call_operand.vmem [shape: f32[1,64], index: 2, kind: input, shape index: {}]   ;;  %s412_s5 = inlined_call_operand.vmem [shape: f32[16,1], index: 5, kind: output, shape index: {}]  }
   0x1   :  { %v24_v0 = vld [vmem:[%s407_s1] sm:$0xff]  ;;  %v25_v1 = vld [vmem:[%s407_s1 + $0x8] sm:$0xff]  ;;  %v26_v2 = vld [vmem:[%s407_s1 + $0x10] sm:$0xff]  ;;  %v10_v20 = vstv %s410_s4 }
   0x2   :  { %v289_v3 = vpack.c.bf16 %v25_v1, %v24_v0  ;;  %v27_v4 = vld [vmem:[%s407_s1 + $0x18] sm:$0xff]  ;;  %v22_v5 = vld [vmem:[%s408_s0] sm:$0xff]  ;;  %v120_v8 = vld [vmem:[%s409_s3 + $0x8] sm:$0xff]  ;;  %11 = vst [vmem:[#allocation2] sm:$0x1] %v10_v20 }
   0x3   :  { %v293_v6 = vpack.c.bf16 %v27_v4, %v26_v2  ;;  %267 = vmatprep.mubr.msk.f32.mxu0 %vm35_vm0, %v22_v5  ;;  %v119_v7 = vld [vmem:[%s409_s3] sm:$0xff]  ;;  %v121_v9 = vld [vmem:[%s409_s3 + $0x10] sm:$0xff]  ;;  %v122_v11 = vld [vmem:[%s409_s3 + $0x18] sm:$0xff] }
   0x4   :  { %290 = vmatprep.subr.bf16.mxu0 %v289_v3  ;;  %v297_v10 = vpack.c.bf16 %v120_v8, %v119_v7  ;;  %v301_v12 = vpack.c.bf16 %v122_v11, %v121_v9  ;;  %v123_v13 = vld [vmem:[%s409_s3 + $0x20] sm:$0xff]  ;;  %v124_v14 = vld [vmem:[%s409_s3 + $0x28] sm:$0xff]  ;;  %v125_v17 = vld [vmem:[%s409_s3 + $0x30] sm:$0xff] }
   0x5   :  { %292 = vmatpush3.bf16.msra.mxu0 %v289_v3  ;;  %v305_v15 = vpack.c.bf16 %v124_v14, %v123_v13  ;;  %v23_v16 = vld [vmem:[%s408_s0 + $0x8] sm:$0xff]  ;;  %v126_v18 = vld [vmem:[%s409_s3 + $0x38] sm:$0xff]  ;;  %v235_v21 = vld [vmem:[%s411_s2] ss:$0 sm:$0xff] }
   0x6   :  { %294 = vmatprep.subr.bf16.mxu0 %v293_v6  ;;  %298 = vmatprep.subr.bf16.mxu1 %v297_v10  ;;  %v309_v19 = vpack.c.bf16 %v126_v18, %v125_v17 }
   0x7   :  { %300 = vmatpush3.bf16.msra.mxu1 %v297_v10 }
   0x8   :  { %302 = vmatprep.subr.bf16.mxu1 %v301_v12 }
   0x9   :  { %296 = vmatpush3.bf16.msra.mxu0 %v293_v6  ;;  %v238_v28 = vld [vmem:[#allocation2] ss:$0 sm:$0xff] }
   0xb   :  { %304 = vmatpush3.bf16.msra.mxu1 %v301_v12 }
   0xc   :  { %268 = vmatmul.mubr.msk.f32.vlgmr.msra.gmra.mrb[0].mxu0 %vm35_vm0, %v23_v16  ;;  %306 = vmatprep.subr.bf16.mxu1 %v305_v15 }
   0xf   :  { %308 = vmatpush3.bf16.msra.mxu1 %v305_v15 }
  0x10   :  { %310 = vmatprep.subr.bf16.mxu1 %v309_v19 }
  0x13   :  { %312 = vmatpush3.bf16.msra.mxu1 %v309_v19 }
  0xdf   :  { %v269_v22 = vpop.f32.mrb[0].mxu0 }
  0xe0   :  { %v114_v23 = vadd.f32 %v269_v22, %v235_v21  ;;  %v108_v24 = vpop.f32.mrb[1].mxu0 }
  0xe1   :  { %v109_v25 = vadd.f32 %v235_v21, %v108_v24 }
  0xe2   :  { %v118_v27 = vmax.f32 %v114_v23, 0.0 }
  0xe3   :  { %v117_v26 = vmax.f32 %v109_v25, 0.0 }
  0xe5   :  { %286 = vmatprep.mubr.msk.f32.mxu1 %vm134_vm1, %v117_v26 }
  0xe6   :  { %287 = vmatmul.mubr.msk.f32.vlgmr.msra.gmra.mrb[0].mxu1 %vm134_vm1, %v118_v27 }
 0x1b9   :  { %v288_v29 = vpop.f32.mrb[0].mxu1 }
 0x1ba   :  { %v213_v30 = vadd.f32 %v288_v29, %v238_v28  ;;  %v207_v31 = vpop.f32.mrb[1].mxu1 }
 0x1bb   :  { %v208_v32 = vadd.f32 %v238_v28, %v207_v31 }
 0x1bc   :  { %v242_v33 = vmul.f32 -1.442695, %v213_v30 }
 0x1bd   :  { %v241_v34 = vmul.f32 -1.442695, %v208_v32 }
 0x1be   :  { %313 = vpow2.f32 %v242_v33 }
 0x1bf   :  { %315 = vpow2.f32 %v241_v34 }
 0x1c8   :  { %v314_v35 = vpop.eup %313 }
 0x1c9   :  { %v316_v36 = vpop.eup %315  ;;  %v223_v37 = vadd.f32 1.0, %v314_v35 }
 0x1ca   :  { %v222_v38 = vadd.f32 1.0, %v316_v36 }
 0x1cb   :  { %317 = vrcp.f32 %v223_v37 }
 0x1cc   :  { %319 = vrcp.f32 %v222_v38 }
 0x1d5   :  { %v318_v39 = vpop.eup %317 }
 0x1d6   :  { %v320_v40 = vpop.eup %319  ;;  %230 = vst.msk [vmem:[%s412_s5 + $0x8] sm:$0xff] %vm228_vm2, %v318_v39 }
 0x1d7   :  { %229 = vst.msk [vmem:[%s412_s5] sm:$0xff] %vm228_vm2, %v320_v40 }

// kernel: gcn_forward.7
= control target key start
LH: loop header
LB: loop body
LE: loop exit
PB: predicated region body
PF: predicated region fallthrough
CT: control target
= control target key end

     0   :  { %vm76_vm0 = vcmask 130048   ;;  %s490_s1 = inlined_call_operand.vmem [shape: bf16[16,128], index: 1, kind: input, shape index: {}]   ;;  %s491_s0 = inlined_call_operand.vmem [shape: bf16[128,16], index: 0, kind: input, shape index: {}]   ;;  %s492_s2 = inlined_call_operand.vmem [shape: bf16[128,128], index: 2, kind: output, shape index: {}]  }
   0x1   :  { %v407_v0 = vld [vmem:[%s490_s1] sm:$0xff]   ;;  %v410_v3 = vld [vmem:[%s491_s0 + $0x8] sm:$0xff]   ;;  %v412_v5 = vld [vmem:[%s491_s0 + $0x10] sm:$0xff]  }
   0x2   :  { %v408_v1 = vld [vmem:[%s491_s0] sm:$0xff]   ;;  %387 = vmatprep.subr.bf16.mxu0 %v407_v0  ;;  %405 = vmatprep.subr.bf16.mxu1 %v407_v0  ;;  %v411_v4 = vld [vmem:[%s491_s0 + $0x28] sm:$0xff]   ;;  %v413_v6 = vld [vmem:[%s491_s0 + $0x30] sm:$0xff]  }
   0x3   :  { %v409_v2 = vld [vmem:[%s491_s0 + $0x20] sm:$0xff]   ;;  %388 = vmatpush3.bf16.msra.mxu0 %v407_v0  ;;  %406 = vmatpush3.bf16.msra.mxu1 %v407_v0  ;;  %v414_v7 = vld [vmem:[%s491_s0 + $0x18] sm:$0xff]  }
   0x4   :  { %389 = vmatprep.mubr.msk.bf16.mxu0 %vm76_vm0, %v408_v1  ;;  %397 = vmatprep.mubr.msk.bf16.mxu1 %vm76_vm0, %v409_v2  ;;  %v415_v8 = vld [vmem:[%s491_s0 + $0x38] sm:$0xff]  }
   0x6   :  { %390 = vmatmul.mubr.msk.bf16.vlgmr.msra.gmra.mrb[0].mxu0 %vm76_vm0, %v410_v3  ;;  %398 = vmatmul.mubr.msk.bf16.vlgmr.msra.gmra.mrb[0].mxu1 %vm76_vm0, %v411_v4 }
   0x7   :  { %393 = vmatprep.mubr.msk.bf16.mxu0 %vm76_vm0, %v412_v5  ;;  %401 = vmatprep.mubr.msk.bf16.mxu1 %vm76_vm0, %v413_v6 }
   0xe   :  { %394 = vmatmul.mubr.msk.bf16.gmra.mrb[4].mxu0 %vm76_vm0, %v414_v7  ;;  %402 = vmatmul.mubr.msk.bf16.gmra.mrb[4].mxu1 %vm76_vm0, %v415_v8 }
  0xd9   :  { %v391_v9 = vpop.f32.mrb[0].mxu0  ;;  %v399_v10 = vpop.f32.mrb[0].mxu1 }
  0xda   :  { %v135_v11 = vpop.f32.mrb[1].mxu0  ;;  %v167_v12 = vpop.f32.mrb[1].mxu1 }
  0xdb   :  { %v392_v13 = vpop.f32.mrb[2].mxu0  ;;  %v400_v14 = vpop.f32.mrb[2].mxu1 }
  0xdc   :  { %v339_v15 = vpack.c.bf16 %v392_v13, %v391_v9  ;;  %v359_v16 = vpack.c.bf16 %v400_v14, %v399_v10  ;;  %v138_v17 = vpop.f32.mrb[3].mxu0  ;;  %v170_v18 = vpop.f32.mrb[3].mxu1 }
  0xdd   :  { %v334_v19 = vpack.c.bf16 %v138_v17, %v135_v11  ;;  %v354_v20 = vpack.c.bf16 %v170_v18, %v167_v12 }
  0xde   :  { %371 = vst [vmem:[%s492_s2 + $0x8] sm:$0xff] %v339_v15   ;;  %375 = vst [vmem:[%s492_s2 + $0x28] sm:$0xff] %v359_v16  }
  0xdf   :  { %335 = vst [vmem:[%s492_s2] sm:$0xff] %v334_v19   ;;  %374 = vst [vmem:[%s492_s2 + $0x20] sm:$0xff] %v354_v20  }
  0xe1   :  { %v395_v21 = vpop.f32.mrb[4].mxu0  ;;  %v403_v22 = vpop.f32.mrb[4].mxu1 }
  0xe2   :  { %v151_v23 = vpop.f32.mrb[5].mxu0  ;;  %v183_v24 = vpop.f32.mrb[5].mxu1 }
  0xe3   :  { %v396_v25 = vpop.f32.mrb[6].mxu0  ;;  %v404_v26 = vpop.f32.mrb[6].mxu1 }
  0xe4   :  { %v349_v27 = vpack.c.bf16 %v396_v25, %v395_v21  ;;  %v369_v28 = vpack.c.bf16 %v404_v26, %v403_v22  ;;  %v154_v29 = vpop.f32.mrb[7].mxu0  ;;  %v186_v30 = vpop.f32.mrb[7].mxu1 }
  0xe5   :  { %v344_v31 = vpack.c.bf16 %v154_v29, %v151_v23  ;;  %v364_v32 = vpack.c.bf16 %v186_v30, %v183_v24 }
  0xe6   :  { %373 = vst [vmem:[%s492_s2 + $0x18] sm:$0xff] %v349_v27   ;;  %377 = vst [vmem:[%s492_s2 + $0x38] sm:$0xff] %v369_v28  }
  0xe7   :  { %372 = vst [vmem:[%s492_s2 + $0x10] sm:$0xff] %v344_v31   ;;  %376 = vst [vmem:[%s492_s2 + $0x30] sm:$0xff] %v364_v32  }

// kernel: gcn_forward.8
= control target key start
LH: loop header
LB: loop body
LE: loop exit
PB: predicated region body
PF: predicated region fallthrough
CT: control target
= control target key end

     0   :  { %s655_s1 = inlined_call_operand.vmem [shape: bf16[128,128], index: 1, kind: input, shape index: {}]   ;;  %s656_s0 = inlined_call_operand.vmem [shape: bf16[128,128], index: 0, kind: input, shape index: {}]   ;;  %s657_s2 = inlined_call_operand.vmem [shape: f32[1,128], index: 2, kind: input, shape index: {}]   ;;  %s658_s3 = inlined_call_operand.vmem [shape: f32[1,128], index: 3, kind: input, shape index: {}]   ;;  %s659_s4 = inlined_call_operand.vmem [shape: f32[128,128], index: 4, kind: output, shape index: {}]  }
   0x1   :  { %v494_v0 = vld [vmem:[%s655_s1] sm:$0xff]   ;;  %v495_v1 = vld [vmem:[%s655_s1 + $0x8] sm:$0xff]   ;;  %v496_v2 = vld [vmem:[%s655_s1 + $0x10] sm:$0xff]  }
   0x2   :  { %446 = vmatprep.subr.bf16.mxu0 %v494_v0  ;;  %478 = vmatprep.subr.bf16.mxu1 %v494_v0  ;;  %v497_v3 = vld [vmem:[%s655_s1 + $0x18] sm:$0xff]   ;;  %v502_v4 = vld [vmem:[%s656_s0] sm:$0xff]   ;;  %v499_v7 = vld [vmem:[%s655_s1 + $0x28] sm:$0xff]  }
   0x3   :  { %447 = vmatpush3.bf16.msra.mxu0 %v494_v0  ;;  %486 = vmatpush3.bf16.msra.mxu1 %v494_v0  ;;  %v503_v5 = vld [vmem:[%s656_s0 + $0x20] sm:$0xff]   ;;  %v500_v8 = vld [vmem:[%s655_s1 + $0x30] sm:$0xff]   ;;  %v501_v9 = vld [vmem:[%s655_s1 + $0x38] sm:$0xff]  }
   0x4   :  { %448 = vmatprep.subr.bf16.mxu0 %v495_v1  ;;  %479 = vmatprep.subr.bf16.mxu1 %v495_v1  ;;  %v498_v6 = vld [vmem:[%s655_s1 + $0x20] sm:$0xff]   ;;  %v504_v10 = vld [vmem:[%s656_s0 + $0x8] sm:$0xff]   ;;  %v506_v12 = vld [vmem:[%s656_s0 + $0x10] sm:$0xff]  }
   0x5   :  { %462 = vmatprep.mubr.bf16.mxu0 %v502_v4  ;;  %470 = vmatprep.mubr.bf16.mxu1 %v503_v5  ;;  %v505_v11 = vld [vmem:[%s656_s0 + $0x28] sm:$0xff]   ;;  %v507_v13 = vld [vmem:[%s656_s0 + $0x30] sm:$0xff]   ;;  %v508_v14 = vld [vmem:[%s656_s0 + $0x18] sm:$0xff]  }
   0x6   :  { %v509_v15 = vld [vmem:[%s656_s0 + $0x38] sm:$0xff]   ;;  %v428_v16 = vld [vmem:[%s657_s2] ss:$0 sm:$0xff] }
   0x7   :  { %449 = vmatpush3.bf16.msra.mxu0 %v495_v1  ;;  %487 = vmatpush3.bf16.msra.mxu1 %v495_v1  ;;  %v589_v18 = vld [vmem:[%s658_s3] ss:$0 sm:$0xff] }
   0x8   :  { %450 = vmatprep.subr.bf16.mxu0 %v496_v2  ;;  %480 = vmatprep.subr.bf16.mxu1 %v496_v2 }
   0xb   :  { %451 = vmatpush3.bf16.msra.mxu0 %v496_v2  ;;  %488 = vmatpush3.bf16.msra.mxu1 %v496_v2 }
   0xc   :  { %452 = vmatprep.subr.bf16.mxu0 %v497_v3  ;;  %481 = vmatprep.subr.bf16.mxu1 %v497_v3 }
   0xf   :  { %453 = vmatpush3.bf16.msra.mxu0 %v497_v3  ;;  %489 = vmatpush3.bf16.msra.mxu1 %v497_v3 }
  0x10   :  { %454 = vmatprep.subr.bf16.mxu0 %v498_v6  ;;  %482 = vmatprep.subr.bf16.mxu1 %v498_v6 }
  0x13   :  { %455 = vmatpush3.bf16.msra.mxu0 %v498_v6  ;;  %490 = vmatpush3.bf16.msra.mxu1 %v498_v6 }
  0x14   :  { %456 = vmatprep.subr.bf16.mxu0 %v499_v7  ;;  %483 = vmatprep.subr.bf16.mxu1 %v499_v7 }
  0x17   :  { %457 = vmatpush3.bf16.msra.mxu0 %v499_v7  ;;  %491 = vmatpush3.bf16.msra.mxu1 %v499_v7 }
  0x18   :  { %458 = vmatprep.subr.bf16.mxu0 %v500_v8  ;;  %484 = vmatprep.subr.bf16.mxu1 %v500_v8 }
  0x1b   :  { %459 = vmatpush3.bf16.msra.mxu0 %v500_v8  ;;  %492 = vmatpush3.bf16.msra.mxu1 %v500_v8 }
  0x1c   :  { %460 = vmatprep.subr.bf16.mxu0 %v501_v9  ;;  %485 = vmatprep.subr.bf16.mxu1 %v501_v9 }
  0x1f   :  { %461 = vmatpush3.bf16.msra.mxu0 %v501_v9  ;;  %493 = vmatpush3.bf16.msra.mxu1 %v501_v9 }
  0x22   :  { %463 = vmatmul.mubr.bf16.vlgmr.msra.gmra.mrb[0].mxu0 %v504_v10  ;;  %471 = vmatmul.mubr.bf16.vlgmr.msra.gmra.mrb[0].mxu1 %v505_v11 }
  0x23   :  { %466 = vmatprep.mubr.bf16.mxu0 %v506_v12  ;;  %474 = vmatprep.mubr.bf16.mxu1 %v507_v13 }
  0x2a   :  { %467 = vmatmul.mubr.bf16.gmra.mrb[4].mxu0 %v508_v14  ;;  %475 = vmatmul.mubr.bf16.gmra.mrb[4].mxu1 %v509_v15 }
  0xf5   :  { %v464_v17 = vpop.f32.mrb[0].mxu0  ;;  %v472_v19 = vpop.f32.mrb[0].mxu1 }
  0xf6   :  { %v339_v20 = vmul.f32 %v464_v17, %v428_v16  ;;  %v347_v21 = vmul.f32 %v472_v19, %v428_v16  ;;  %v216_v22 = vpop.f32.mrb[1].mxu0  ;;  %v248_v23 = vpop.f32.mrb[1].mxu1 }
  0xf7   :  { %v337_v24 = vmul.f32 %v428_v16, %v216_v22  ;;  %v345_v25 = vmul.f32 %v428_v16, %v248_v23  ;;  %v465_v26 = vpop.f32.mrb[2].mxu0  ;;  %v473_v27 = vpop.f32.mrb[2].mxu1 }
  0xf8   :  { %v362_v28 = vadd.f32 %v589_v18, %v339_v20  ;;  %v370_v29 = vadd.f32 %v589_v18, %v347_v21  ;;  %v340_v30 = vmul.f32 %v465_v26, %v428_v16  ;;  %v348_v31 = vmul.f32 %v473_v27, %v428_v16  ;;  %v219_v32 = vpop.f32.mrb[3].mxu0  ;;  %v251_v33 = vpop.f32.mrb[3].mxu1 }
  0xf9   :  { %v360_v34 = vadd.f32 %v589_v18, %v337_v24  ;;  %v368_v35 = vadd.f32 %v589_v18, %v345_v25  ;;  %v338_v36 = vmul.f32 %v428_v16, %v219_v32  ;;  %v346_v37 = vmul.f32 %v428_v16, %v251_v33 }
  0xfa   :  { %v378_v38 = vmax.f32 %v362_v28, 0.0  ;;  %v386_v39 = vmax.f32 %v370_v29, 0.0  ;;  %v363_v40 = vadd.f32 %v589_v18, %v340_v30  ;;  %v371_v41 = vadd.f32 %v589_v18, %v348_v31 }
  0xfb   :  { %v376_v42 = vmax.f32 %v360_v34, 0.0  ;;  %v384_v43 = vmax.f32 %v368_v35, 0.0  ;;  %v361_v44 = vadd.f32 %v589_v18, %v338_v36  ;;  %v369_v45 = vadd.f32 %v589_v18, %v346_v37 }
  0xfc   :  { %394 = vst [vmem:[%s659_s4 + $0x10] sm:$0xff] %v378_v38  ;;  %402 = vst [vmem:[%s659_s4 + $0x50] sm:$0xff] %v386_v39  ;;  %v379_v46 = vmax.f32 %v363_v40, 0.0  ;;  %v387_v47 = vmax.f32 %v371_v41, 0.0 }
  0xfd   :  { %392 = vst [vmem:[%s659_s4] sm:$0xff] %v376_v42  ;;  %400 = vst [vmem:[%s659_s4 + $0x40] sm:$0xff] %v384_v43  ;;  %v377_v48 = vmax.f32 %v361_v44, 0.0  ;;  %v385_v49 = vmax.f32 %v369_v45, 0.0  ;;  %v468_v50 = vpop.f32.mrb[4].mxu0  ;;  %v476_v51 = vpop.f32.mrb[4].mxu1 }
  0xfe   :  { %395 = vst [vmem:[%s659_s4 + $0x18] sm:$0xff] %v379_v46  ;;  %403 = vst [vmem:[%s659_s4 + $0x58] sm:$0xff] %v387_v47  ;;  %v343_v52 = vmul.f32 %v468_v50, %v428_v16  ;;  %v351_v53 = vmul.f32 %v476_v51, %v428_v16  ;;  %v232_v54 = vpop.f32.mrb[5].mxu0  ;;  %v264_v55 = vpop.f32.mrb[5].mxu1 }
  0xff   :  { %393 = vst [vmem:[%s659_s4 + $0x8] sm:$0xff] %v377_v48  ;;  %401 = vst [vmem:[%s659_s4 + $0x48] sm:$0xff] %v385_v49  ;;  %v341_v56 = vmul.f32 %v428_v16, %v232_v54  ;;  %v349_v57 = vmul.f32 %v428_v16, %v264_v55  ;;  %v469_v58 = vpop.f32.mrb[6].mxu0  ;;  %v477_v59 = vpop.f32.mrb[6].mxu1 }
 0x100   :  { %v366_v60 = vadd.f32 %v589_v18, %v343_v52  ;;  %v374_v61 = vadd.f32 %v589_v18, %v351_v53  ;;  %v344_v62 = vmul.f32 %v469_v58, %v428_v16  ;;  %v352_v63 = vmul.f32 %v477_v59, %v428_v16  ;;  %v235_v0 = vpop.f32.mrb[7].mxu0  ;;  %v267_v1 = vpop.f32.mrb[7].mxu1 }
 0x101   :  { %v364_v2 = vadd.f32 %v589_v18, %v341_v56  ;;  %v372_v3 = vadd.f32 %v589_v18, %v349_v57  ;;  %v342_v4 = vmul.f32 %v428_v16, %v235_v0  ;;  %v350_v5 = vmul.f32 %v428_v16, %v267_v1 }
 0x102   :  { %v382_v6 = vmax.f32 %v366_v60, 0.0  ;;  %v390_v7 = vmax.f32 %v374_v61, 0.0  ;;  %v367_v8 = vadd.f32 %v589_v18, %v344_v62  ;;  %v375_v9 = vadd.f32 %v589_v18, %v352_v63 }
 0x103   :  { %v380_v10 = vmax.f32 %v364_v2, 0.0  ;;  %v388_v11 = vmax.f32 %v372_v3, 0.0  ;;  %v365_v12 = vadd.f32 %v589_v18, %v342_v4  ;;  %v373_v13 = vadd.f32 %v589_v18, %v350_v5 }
 0x104   :  { %398 = vst [vmem:[%s659_s4 + $0x30] sm:$0xff] %v382_v6  ;;  %406 = vst [vmem:[%s659_s4 + $0x70] sm:$0xff] %v390_v7  ;;  %v383_v14 = vmax.f32 %v367_v8, 0.0  ;;  %v391_v15 = vmax.f32 %v375_v9, 0.0 }
 0x105   :  { %396 = vst [vmem:[%s659_s4 + $0x20] sm:$0xff] %v380_v10  ;;  %404 = vst [vmem:[%s659_s4 + $0x60] sm:$0xff] %v388_v11  ;;  %v381_v16 = vmax.f32 %v365_v12, 0.0  ;;  %v389_v17 = vmax.f32 %v373_v13, 0.0 }
 0x106   :  { %399 = vst [vmem:[%s659_s4 + $0x38] sm:$0xff] %v383_v14  ;;  %407 = vst [vmem:[%s659_s4 + $0x78] sm:$0xff] %v391_v15 }
 0x107   :  { %397 = vst [vmem:[%s659_s4 + $0x28] sm:$0xff] %v381_v16  ;;  %405 = vst [vmem:[%s659_s4 + $0x68] sm:$0xff] %v389_v17 }

// kernel: gcn_forward.9
= control target key start
LH: loop header
LB: loop body
LE: loop exit
PB: predicated region body
PF: predicated region fallthrough
CT: control target
= control target key end

     0   :  { %s583_s1 = inlined_call_operand.vmem [shape: bf16[128,128], index: 1, kind: input, shape index: {}]   ;;  %s584_s0 = inlined_call_operand.vmem [shape: bf16[128,128], index: 0, kind: input, shape index: {}]   ;;  %s585_s2 = inlined_call_operand.vmem [shape: bf16[128,128], index: 2, kind: output, shape index: {}]  }
   0x1   :  { %v480_v0 = vld [vmem:[%s583_s1] sm:$0xff]   ;;  %v481_v1 = vld [vmem:[%s583_s1 + $0x8] sm:$0xff]   ;;  %v482_v2 = vld [vmem:[%s583_s1 + $0x10] sm:$0xff]  }
   0x2   :  { %432 = vmatprep.subr.bf16.mxu0 %v480_v0  ;;  %464 = vmatprep.subr.bf16.mxu1 %v480_v0  ;;  %v483_v3 = vld [vmem:[%s583_s1 + $0x18] sm:$0xff]   ;;  %v488_v4 = vld [vmem:[%s584_s0] sm:$0xff]   ;;  %v485_v7 = vld [vmem:[%s583_s1 + $0x28] sm:$0xff]  }
   0x3   :  { %433 = vmatpush3.bf16.msra.mxu0 %v480_v0  ;;  %472 = vmatpush3.bf16.msra.mxu1 %v480_v0  ;;  %v489_v5 = vld [vmem:[%s584_s0 + $0x20] sm:$0xff]   ;;  %v486_v8 = vld [vmem:[%s583_s1 + $0x30] sm:$0xff]   ;;  %v487_v9 = vld [vmem:[%s583_s1 + $0x38] sm:$0xff]  }
   0x4   :  { %434 = vmatprep.subr.bf16.mxu0 %v481_v1  ;;  %465 = vmatprep.subr.bf16.mxu1 %v481_v1  ;;  %v484_v6 = vld [vmem:[%s583_s1 + $0x20] sm:$0xff]   ;;  %v490_v10 = vld [vmem:[%s584_s0 + $0x8] sm:$0xff]   ;;  %v492_v12 = vld [vmem:[%s584_s0 + $0x10] sm:$0xff]  }
   0x5   :  { %448 = vmatprep.mubr.bf16.mxu0 %v488_v4  ;;  %456 = vmatprep.mubr.bf16.mxu1 %v489_v5  ;;  %v491_v11 = vld [vmem:[%s584_s0 + $0x28] sm:$0xff]   ;;  %v493_v13 = vld [vmem:[%s584_s0 + $0x30] sm:$0xff]   ;;  %v494_v14 = vld [vmem:[%s584_s0 + $0x18] sm:$0xff]  }
   0x6   :  { %v495_v15 = vld [vmem:[%s584_s0 + $0x38] sm:$0xff]  }
   0x7   :  { %435 = vmatpush3.bf16.msra.mxu0 %v481_v1  ;;  %473 = vmatpush3.bf16.msra.mxu1 %v481_v1 }
   0x8   :  { %436 = vmatprep.subr.bf16.mxu0 %v482_v2  ;;  %466 = vmatprep.subr.bf16.mxu1 %v482_v2 }
   0xb   :  { %437 = vmatpush3.bf16.msra.mxu0 %v482_v2  ;;  %474 = vmatpush3.bf16.msra.mxu1 %v482_v2 }
   0xc   :  { %438 = vmatprep.subr.bf16.mxu0 %v483_v3  ;;  %467 = vmatprep.subr.bf16.mxu1 %v483_v3 }
   0xf   :  { %439 = vmatpush3.bf16.msra.mxu0 %v483_v3  ;;  %475 = vmatpush3.bf16.msra.mxu1 %v483_v3 }
  0x10   :  { %440 = vmatprep.subr.bf16.mxu0 %v484_v6  ;;  %468 = vmatprep.subr.bf16.mxu1 %v484_v6 }
  0x13   :  { %441 = vmatpush3.bf16.msra.mxu0 %v484_v6  ;;  %476 = vmatpush3.bf16.msra.mxu1 %v484_v6 }
  0x14   :  { %442 = vmatprep.subr.bf16.mxu0 %v485_v7  ;;  %469 = vmatprep.subr.bf16.mxu1 %v485_v7 }
  0x17   :  { %443 = vmatpush3.bf16.msra.mxu0 %v485_v7  ;;  %477 = vmatpush3.bf16.msra.mxu1 %v485_v7 }
  0x18   :  { %444 = vmatprep.subr.bf16.mxu0 %v486_v8  ;;  %470 = vmatprep.subr.bf16.mxu1 %v486_v8 }
  0x1b   :  { %445 = vmatpush3.bf16.msra.mxu0 %v486_v8  ;;  %478 = vmatpush3.bf16.msra.mxu1 %v486_v8 }
  0x1c   :  { %446 = vmatprep.subr.bf16.mxu0 %v487_v9  ;;  %471 = vmatprep.subr.bf16.mxu1 %v487_v9 }
  0x1f   :  { %447 = vmatpush3.bf16.msra.mxu0 %v487_v9  ;;  %479 = vmatpush3.bf16.msra.mxu1 %v487_v9 }
  0x22   :  { %449 = vmatmul.mubr.bf16.vlgmr.msra.gmra.mrb[0].mxu0 %v490_v10  ;;  %457 = vmatmul.mubr.bf16.vlgmr.msra.gmra.mrb[0].mxu1 %v491_v11 }
  0x23   :  { %452 = vmatprep.mubr.bf16.mxu0 %v492_v12  ;;  %460 = vmatprep.mubr.bf16.mxu1 %v493_v13 }
  0x2a   :  { %453 = vmatmul.mubr.bf16.gmra.mrb[4].mxu0 %v494_v14  ;;  %461 = vmatmul.mubr.bf16.gmra.mrb[4].mxu1 %v495_v15 }
  0xf5   :  { %v450_v16 = vpop.f32.mrb[0].mxu0  ;;  %v458_v17 = vpop.f32.mrb[0].mxu1 }
  0xf6   :  { %v174_v18 = vpop.f32.mrb[1].mxu0  ;;  %v206_v19 = vpop.f32.mrb[1].mxu1 }
  0xf7   :  { %v451_v20 = vpop.f32.mrb[2].mxu0  ;;  %v459_v21 = vpop.f32.mrb[2].mxu1 }
  0xf8   :  { %v377_v22 = vpack.c.bf16 %v451_v20, %v450_v16  ;;  %v397_v23 = vpack.c.bf16 %v459_v21, %v458_v17  ;;  %v177_v24 = vpop.f32.mrb[3].mxu0  ;;  %v209_v25 = vpop.f32.mrb[3].mxu1 }
  0xf9   :  { %v372_v26 = vpack.c.bf16 %v177_v24, %v174_v18  ;;  %v392_v27 = vpack.c.bf16 %v209_v25, %v206_v19 }
  0xfa   :  { %409 = vst [vmem:[%s585_s2 + $0x8] sm:$0xff] %v377_v22   ;;  %413 = vst [vmem:[%s585_s2 + $0x28] sm:$0xff] %v397_v23  }
  0xfb   :  { %373 = vst [vmem:[%s585_s2] sm:$0xff] %v372_v26   ;;  %412 = vst [vmem:[%s585_s2 + $0x20] sm:$0xff] %v392_v27  }
  0xfd   :  { %v454_v28 = vpop.f32.mrb[4].mxu0  ;;  %v462_v29 = vpop.f32.mrb[4].mxu1 }
  0xfe   :  { %v190_v30 = vpop.f32.mrb[5].mxu0  ;;  %v222_v31 = vpop.f32.mrb[5].mxu1 }
  0xff   :  { %v455_v32 = vpop.f32.mrb[6].mxu0  ;;  %v463_v33 = vpop.f32.mrb[6].mxu1 }
 0x100   :  { %v387_v34 = vpack.c.bf16 %v455_v32, %v454_v28  ;;  %v407_v35 = vpack.c.bf16 %v463_v33, %v462_v29  ;;  %v193_v36 = vpop.f32.mrb[7].mxu0  ;;  %v225_v37 = vpop.f32.mrb[7].mxu1 }
 0x101   :  { %v382_v38 = vpack.c.bf16 %v193_v36, %v190_v30  ;;  %v402_v39 = vpack.c.bf16 %v225_v37, %v222_v31 }
 0x102   :  { %411 = vst [vmem:[%s585_s2 + $0x18] sm:$0xff] %v387_v34   ;;  %415 = vst [vmem:[%s585_s2 + $0x38] sm:$0xff] %v407_v35  }
 0x103   :  { %410 = vst [vmem:[%s585_s2 + $0x10] sm:$0xff] %v382_v38   ;;  %414 = vst [vmem:[%s585_s2 + $0x30] sm:$0xff] %v402_v39  }

</bundles_post_ra>
